<compile_context>
chip_gen: v6e
topology: v6e:2x2x1
jax: 0.10.0
libtpu: 0.0.40
codegen_flags: <defaults>
</compile_context>

<pallas_src>
import jax
import jax.numpy as jnp
from jax.experimental import pallas as pl
from jax.experimental.pallas import tpu as pltpu

LANE = 128
MIB = 1024 * 1024


def add_one_kernel(w_ref, x_ref, o_ref):
    # w_ref: (1,) float32 scalar in SMEM; x_ref/o_ref: (block_rows, 128) VMEM tiles.
    w = w_ref[0]
    o_ref[...] = (x_ref[...].astype(jnp.float32) + w).astype(o_ref.dtype)


def _physical_vmem_bytes(default=64 * MIB):
    """Physical VMEM per TensorCore; conservative (v7x-sized) fallback."""
    try:
        info = pltpu.get_tpu_info()
        cap = getattr(info, "vmem_capacity_bytes", None)
        if cap:
            return int(cap)
    except Exception:
        pass
    return default


def _sublane_multiple(itemsize):
    # Packed-dtype sublane multiples: 8 (32-bit), 16 (16-bit), 32 (8-bit).
    return 32 if itemsize == 1 else (16 if itemsize == 2 else 8)


def add_one(x, weight):
    """Compute x + weight (scalar broadcast) with a Pallas TPU kernel."""
    out_dtype = jnp.result_type(x.dtype, weight.dtype)
    orig_shape = x.shape
    N = int(x.size)
    if N == 0:
        # Empty tensor: nothing to add.
        return jnp.zeros(orig_shape, out_dtype)

    in_isz = jnp.dtype(x.dtype).itemsize
    out_isz = jnp.dtype(out_dtype).itemsize
    sub = max(_sublane_multiple(in_isz), _sublane_multiple(out_isz))

    # Flatten to a lane-dense (rows, 128) slab.  Pad only the ragged tail to a
    # multiple of 128 (<= 127 elements); 128-aligned sizes take the zero-copy
    # reshape-only path.
    flat = x.reshape(-1)
    Np = ((N + LANE - 1) // LANE) * LANE
    if Np != N:
        flat = jnp.pad(flat, (0, Np - N))
    rows = Np // LANE
    x2d = flat.reshape(rows, LANE)

    # ---- Generation-aware block sizing ----
    # Budget: input and output blocks are each double-buffered -> 4 block-sized
    # VMEM buffers live at once.  Keep headroom and cap the input block at
    # ~8 MiB (already deep on the HBM-roofline plateau on every generation).
    vmem_cap = _physical_vmem_bytes()
    scoped_budget = min(40 * MIB, vmem_cap // 2)
    headroom = 4 * MIB
    per_row_bytes = 2 * LANE * (in_isz + out_isz)  # double-buffered in + out, per row
    br = (scoped_budget - headroom) // per_row_bytes
    br = min(br, (8 * MIB) // (LANE * in_isz))     # <= ~8 MiB of input per block
    br = max(sub, (br // sub) * sub)               # keep (sub, 128) divisibility
    if rows <= br:
        br = rows                                  # full-array block (always legal)
    grid = (pl.cdiv(rows, br),)

    # Raise the scoped-VMEM limit explicitly so the footprint fits on every
    # generation's default (v5e 16 MiB, v6e/v7x 32 MiB).
    vmem_limit = int(per_row_bytes * br + headroom)
    vmem_limit = max(16 * MIB, min(vmem_limit, vmem_cap - 8 * MIB))

    out2d = pl.pallas_call(
        add_one_kernel,
        out_shape=jax.ShapeDtypeStruct((rows, LANE), out_dtype),
        grid_spec=pltpu.PrefetchScalarGridSpec(
            num_scalar_prefetch=0,
            grid=grid,
            in_specs=[
                pl.BlockSpec(memory_space=pltpu.SMEM),       # (1,) scalar weight
                pl.BlockSpec((br, LANE), lambda i: (i, 0)),  # input row-block
            ],
            out_specs=pl.BlockSpec((br, LANE), lambda i: (i, 0)),
        ),
        compiler_params=pltpu.CompilerParams(
            dimension_semantics=("parallel",),
            vmem_limit_bytes=vmem_limit,
        ),
    )(weight.astype(jnp.float32).reshape(1), x2d)

    out_flat = out2d.reshape(-1)
    if Np != N:
        out_flat = out_flat[:N]
    return out_flat.reshape(orig_shape)


if __name__ == "__main__":
    key = jax.random.PRNGKey(0)
    # Small example input consistent with the module: arbitrary tensor shape.
    x = jax.random.normal(key, (2, 4, 16, 16), dtype=jnp.float32)

    # Deterministic parameter init: torch.Tensor([1]) -> scalar weight = 1.0
    weight = jnp.array([1.0], dtype=jnp.float32)

    y = add_one(x, weight)
    y = jax.block_until_ready(y)

    # Correctness check against reference.
    ref = x + weight[0]
    assert y.shape == ref.shape and y.dtype == ref.dtype
    assert jnp.allclose(y, ref), "mismatch vs reference"

    print("KERNEL_OK")
</pallas_src>

<mosaic_0001>
module attributes {stable_mosaic.version = 11 : i64} {
  func.func @add_one_kernel(%arg0: i32, %arg1: memref<1xf32, #tpu.memory_space<smem>>, %arg2: memref<16x128xf32, #tpu.memory_space<vmem>>, %arg3: memref<16x128xf32, #tpu.memory_space<vmem>>) attributes {dimension_semantics = [#tpu.dimension_semantics<parallel>], iteration_bounds = array<i64: 1>, scalar_prefetch = 0 : i64, scratch_operands = 0 : i64, tpu.core_type = #tpu.core_type<tc>, window_params = [{transform_indices = @transform_0, window_bounds = array<i64: 1>}, {transform_indices = @transform_1, window_bounds = array<i64: 16, 128>}, {transform_indices = @transform_2, window_bounds = array<i64: 16, 128>}]} {
    %c0 = arith.constant 0 : index
    %0 = memref.load %arg1[%c0] : memref<1xf32, #tpu.memory_space<smem>>
    %c0_0 = arith.constant 0 : index
    %c0_1 = arith.constant 0 : index
    %1 = vector.load %arg2[%c0_0, %c0_1] : memref<16x128xf32, #tpu.memory_space<vmem>>, vector<16x128xf32>
    %2 = vector.broadcast %0 : f32 to vector<16x128xf32>
    %3 = arith.addf %1, %2 : vector<16x128xf32>
    %c0_2 = arith.constant 0 : index
    %c0_3 = arith.constant 0 : index
    %4 = vector.load %arg3[%c0_2, %c0_3] : memref<16x128xf32, #tpu.memory_space<vmem>>, vector<16x128xf32>
    tpu.vector_store %arg3[%c0_2, %c0_3], %3 {strides = array<i32>} : memref<16x128xf32, #tpu.memory_space<vmem>>, vector<16x128xf32>,
    return
  }
  func.func @transform_0(%arg0: i32) -> i32 {
    %c0_i32 = arith.constant 0 : i32
    %c0_i32_0 = arith.constant 0 : i32
    return %c0_i32 : i32
  }
  func.func @transform_1(%arg0: i32) -> (i32, i32) {
    %c0_i32 = arith.constant 0 : i32
    %c0_i32_0 = arith.constant 0 : i32
    return %arg0, %c0_i32 : i32, i32
  }
  func.func @transform_2(%arg0: i32) -> (i32, i32) {
    %c0_i32 = arith.constant 0 : i32
    %c0_i32_0 = arith.constant 0 : i32
    return %arg0, %c0_i32 : i32, i32
  }
}

</mosaic_0001>

<bundles_post_ra>
// kernel: tpu_custom_call.1
= control target key start
LH: loop header
LB: loop body
LE: loop exit
PB: predicated region body
PF: predicated region fallthrough
CT: control target
= control target key end

     0   :  { %8 = vsyncpa [#allocation4], 0  ;;  %s128_s0 = inlined_call_operand.<no memory space> [shape: f32[1], index: 0, kind: input, shape index: {}]   ;;  %s129_s1 = inlined_call_operand.hbm [shape: f32[16,128], index: 1, kind: input, shape index: {}]   ;;  %s130_s2 = inlined_call_operand.hbm [shape: f32[16,128], index: 2, kind: output, shape index: {}]  }
   0x1   :  { %9 = vsyncpa [#allocation5], 0  ;;  %s100_s9 = smov [#allocation3]  }
   0x2   :  { %s17_s10 = sshll.u32 %s100_s9, 4  ;;  %s18_s10 = int_to_ptr.vmem [resolvable:$true] %s17_s10 }
   0x3   :  { %s64_s11 = scalar_lea.vmem %s18_s10, 256  ;;  %p69_p1 = scmp.lt.s32.totalorder %s18_s10, %s18_s10 }
   0x4   :  { %p65_p0 = scmp.ne.s32.totalorder %s18_s10, %s64_s11  ;;  %p70_p2 = scmp.lt.s32.totalorder %s64_s11, %s64_s11 }
   0x6   :  { %p71_p3 = por %p70_p2, %p69_p1 }
   0x8   :  { %p72_p4 = pnand %p71_p3, %p65_p0 }
   0xa   :  { %75 = shalt.err (!%p72_p4)
}
   0xb   :  { %s101_s12 = smov 128   ;;  %s102_s13 = smov 8  }
   0xc   :  { %23 = dma.hbm_to_vmem [thread:$0]  %s129_s1, 256, %s18_s10, [#allocation4], %s101_s12, %s101_s12, %s102_s13  }
   0xd   :  { %96 = dma.done.wait [#allocation4], 256  }
   0xe   :  { %97 = vsyncadd [#allocation4], 4294967040  ;;  %v30_v0 = vstv %s128_s0  ;;  %s103_s18 = smov [#allocation6]   ;;  %v28_v1 = vld [vmem:[#allocation3] sm:$0xff]  ;;  %v29_v2 = vld [vmem:[#allocation3 + $0x8] sm:$0xff] }
   0xf   :  { %s40_s19 = sshll.u32 %s103_s18, 4  ;;  %v31_v3 = vadd.f32 %v30_v0, %v28_v1  ;;  %v32_v4 = vadd.f32 %v30_v0, %v29_v2  ;;  %s41_s19 = int_to_ptr.vmem [resolvable:$true] %s40_s19 }
  0x10   :  { %s76_s20 = scalar_lea.vmem %s41_s19, 256  ;;  %p81_p6 = scmp.lt.s32.totalorder %s41_s19, %s41_s19 }
  0x11   :  { %33 = vst [vmem:[#allocation6] sm:$0xff] %v31_v3  ;;  %34 = vst [vmem:[#allocation6 + $0x8] sm:$0xff] %v32_v4  ;;  %p77_p5 = scmp.ne.s32.totalorder %s41_s19, %s76_s20  ;;  %p82_p7 = scmp.lt.s32.totalorder %s76_s20, %s76_s20 }
  0x13   :  { %p83_p8 = por %p82_p7, %p81_p6 }
  0x15   :  { %p84_p9 = pnand %p83_p8, %p77_p5 }
  0x17   :  { %87 = shalt.err (!%p84_p9)
}
  0x18   :  { %46 = dma.vmem_to_hbm [thread:$0]  %s41_s19, 256, %s130_s2, [#allocation5], %s101_s12, %s101_s12, %s102_s13  }
  0x19   :  { %98 = dma.done.wait [#allocation5], 256  }
  0x1a   :  { %99 = vsyncadd [#allocation5], 4294967040 }
  0x1b   :  { %50 = vsyncpa [#allocation4], 1 }
  0x1c   :  { %51 = vsyncpa [#allocation5], 1 }

</bundles_post_ra>
